<compile_context>
chip_gen: v5e
topology: v5e:2x2
jax: 0.10.0
libtpu: 0.0.40
codegen_flags: <defaults>
</compile_context>

<pallas_src>
import functools

import jax
import jax.numpy as jnp
from jax.experimental import pallas as pl
from jax.experimental.pallas import tpu as pltpu


def _round_up(a, m):
    return (a + m - 1) // m * m


def _crossnet_kernel(x_ref, wt_ref, bias_ref, o_ref, *, num_layers):
    # x_ref: [tb, Np]; wt_ref: [L, Np, Np] (W_l^T per layer); bias_ref: [L, Np].
    x0 = x_ref[...].astype(jnp.float32)          # residual / elementwise math in f32
    x_l = x0
    for layer in range(num_layers):
        w_t = wt_ref[layer]                      # per-layer load (no whole-tensor read)
        b_l = bias_ref[pl.ds(layer, 1), :].astype(jnp.float32)   # [1, Np], once per layer
        xl_w = jnp.dot(x_l.astype(w_t.dtype), w_t,
                       preferred_element_type=jnp.float32)       # [tb, Np] on the MXU
        x_l = x0 * (xl_w + b_l) + x_l
    o_ref[...] = x_l.astype(o_ref.dtype)


def crossnet_forward(x, W, bias, *, tb=256):
    """CrossNet forward.

    x:    [B, N]        input activations
    W:    [L, N, N]     stacked layer kernels (kernels[l] of the PyTorch module)
    bias: [L, N]        stacked layer biases (bias[l].squeeze(-1))
    tb:   batch tile; pick the largest that fits VMEM (keep >= 2 grid steps on
          v7x so both TensorCores get work).
    """
    B, N = x.shape
    L = W.shape[0]

    Np = max(128, _round_up(N, 128))                          # lane-dense last dim
    tb = max(8, _round_up(min(tb, _round_up(B, 8)), 8))       # sublane-aligned tile
    Bp = _round_up(B, tb)

    # Zero-padding is exact for this recurrence (padded x0 entries are 0).
    xp = jnp.pad(x, ((0, Bp - B), (0, Np - N)))
    Wt = jnp.pad(jnp.transpose(W, (0, 2, 1)),
                 ((0, 0), (0, Np - N), (0, Np - N)))          # [L, Np, Np] = W^T per layer
    bp = jnp.pad(bias, ((0, 0), (0, Np - N)))                 # [L, Np]

    # Rough resident-VMEM estimate: double-buffered weights/bias + in/out tiles.
    est = (2 * (Wt.size * Wt.dtype.itemsize + bp.size * bp.dtype.itemsize)
           + 4 * tb * Np * max(x.dtype.itemsize, 4))
    cp_kwargs = dict(dimension_semantics=("parallel",))
    if est > (12 << 20):                                      # above v5e's 16 MiB scoped default
        cp_kwargs["vmem_limit_bytes"] = min(2 * est + (8 << 20), 64 << 20)

    kernel = functools.partial(_crossnet_kernel, num_layers=L)

    out = pl.pallas_call(
        kernel,
        out_shape=jax.ShapeDtypeStruct((Bp, Np), x.dtype),
        grid_spec=pltpu.PrefetchScalarGridSpec(
            num_scalar_prefetch=0,
            grid=(Bp // tb,),
            in_specs=[
                pl.BlockSpec((tb, Np), lambda b: (b, 0)),         # activations (batch-tiled)
                pl.BlockSpec((L, Np, Np), lambda b: (0, 0, 0)),   # weights (resident, const index)
                pl.BlockSpec((L, Np), lambda b: (0, 0)),          # bias (resident, const index)
            ],
            out_specs=pl.BlockSpec((tb, Np), lambda b: (b, 0)),
        ),
        compiler_params=pltpu.CompilerParams(**cp_kwargs),
    )(xp, Wt, bp)

    return out[:B, :N]


def _reference_forward(x, W, bias):
    """Pure-JAX mirror of the PyTorch CrossNet.forward (for sanity check)."""
    x0 = x
    x_l = x
    for layer in range(W.shape[0]):
        xl_w = x_l @ W[layer].T                  # == (W_l @ x_l^T)^T
        x_l = x0 * (xl_w + bias[layer][None, :]) + x_l
    return x_l


if __name__ == "__main__":
    # Small shapes consistent with the module docstring (in_features=10),
    # with a batch that exercises both batch padding and multiple grid steps.
    B, N, L = 50, 10, 3

    key = jax.random.PRNGKey(0)
    kW, kB, kX = jax.random.split(key, 3)

    # xavier_normal_ for a square [N, N] kernel: std = sqrt(2 / (N + N)).
    std = (2.0 / (N + N)) ** 0.5
    W = std * jax.random.normal(kW, (L, N, N), dtype=jnp.float32)
    # Module init is zeros_; use a small random bias here so the bias path is exercised.
    bias = 0.1 * jax.random.normal(kB, (L, N), dtype=jnp.float32)
    x = jax.random.normal(kX, (B, N), dtype=jnp.float32)

    out = crossnet_forward(x, W, bias, tb=16)   # tb=16 -> 4 grid steps at this tiny batch
    out = jax.block_until_ready(out)

    ref = _reference_forward(x, W, bias)
    assert out.shape == (B, N)
    assert jnp.allclose(out, ref, rtol=1e-4, atol=1e-4), "mismatch vs reference"

    print("KERNEL_OK")
</pallas_src>

<mosaic_0001>
module attributes {stable_mosaic.version = 11 : i64} {
  func.func @_crossnet_kernel(%arg0: i32, %arg1: memref<16x128xf32, #tpu.memory_space<vmem>>, %arg2: memref<3x128x128xf32, #tpu.memory_space<vmem>>, %arg3: memref<3x128xf32, #tpu.memory_space<vmem>>, %arg4: memref<16x128xf32, #tpu.memory_space<vmem>>) attributes {dimension_semantics = [#tpu.dimension_semantics<parallel>], iteration_bounds = array<i64: 4>, scalar_prefetch = 0 : i64, scratch_operands = 0 : i64, tpu.core_type = #tpu.core_type<tc>, window_params = [{transform_indices = @transform_0, window_bounds = array<i64: 16, 128>}, {pipeline_mode = #tpu.pipeline_mode<synchronous>, transform_indices = @transform_1, window_bounds = array<i64: 3, 128, 128>}, {pipeline_mode = #tpu.pipeline_mode<synchronous>, transform_indices = @transform_2, window_bounds = array<i64: 3, 128>}, {transform_indices = @transform_3, window_bounds = array<i64: 16, 128>}]} {
    %c0 = arith.constant 0 : index
    %c0_0 = arith.constant 0 : index
    %0 = vector.load %arg1[%c0, %c0_0] : memref<16x128xf32, #tpu.memory_space<vmem>>, vector<16x128xf32>
    %c0_1 = arith.constant 0 : index
    %c0_2 = arith.constant 0 : index
    %c0_3 = arith.constant 0 : index
    %1 = vector.load %arg2[%c0_1, %c0_2, %c0_3] : memref<3x128x128xf32, #tpu.memory_space<vmem>>, vector<1x128x128xf32>
    %2 = vector.shape_cast %1 : vector<1x128x128xf32> to vector<128x128xf32>
    %c0_4 = arith.constant 0 : index
    %c0_5 = arith.constant 0 : index
    %3 = vector.load %arg3[%c0_4, %c0_5] : memref<3x128xf32, #tpu.memory_space<vmem>>, vector<1x128xf32>
    %cst = arith.constant dense<0.000000e+00> : vector<16x128xf32>
    %4 = tpu.matmul %0, %2, %cst {dimension_numbers = #tpu.dot_dimension_numbers<[1], [0], [0], [1], [0, 0, 1, 1], [], []>} : vector<16x128xf32>, vector<128x128xf32>, vector<16x128xf32> -> vector<16x128xf32>
    %5 = vector.broadcast %3 : vector<1x128xf32> to vector<16x128xf32>
    %6 = arith.addf %4, %5 : vector<16x128xf32>
    %7 = arith.mulf %0, %6 : vector<16x128xf32>
    %8 = arith.addf %7, %0 : vector<16x128xf32>
    %c1 = arith.constant 1 : index
    %c0_6 = arith.constant 0 : index
    %c0_7 = arith.constant 0 : index
    %9 = vector.load %arg2[%c1, %c0_6, %c0_7] : memref<3x128x128xf32, #tpu.memory_space<vmem>>, vector<1x128x128xf32>
    %10 = vector.shape_cast %9 : vector<1x128x128xf32> to vector<128x128xf32>
    %c1_8 = arith.constant 1 : index
    %c0_9 = arith.constant 0 : index
    %11 = vector.load %arg3[%c1_8, %c0_9] : memref<3x128xf32, #tpu.memory_space<vmem>>, vector<1x128xf32>
    %cst_10 = arith.constant dense<0.000000e+00> : vector<16x128xf32>
    %12 = tpu.matmul %8, %10, %cst_10 {dimension_numbers = #tpu.dot_dimension_numbers<[1], [0], [0], [1], [0, 0, 1, 1], [], []>} : vector<16x128xf32>, vector<128x128xf32>, vector<16x128xf32> -> vector<16x128xf32>
    %13 = vector.broadcast %11 : vector<1x128xf32> to vector<16x128xf32>
    %14 = arith.addf %12, %13 : vector<16x128xf32>
    %15 = arith.mulf %0, %14 : vector<16x128xf32>
    %16 = arith.addf %15, %8 : vector<16x128xf32>
    %c2 = arith.constant 2 : index
    %c0_11 = arith.constant 0 : index
    %c0_12 = arith.constant 0 : index
    %17 = vector.load %arg2[%c2, %c0_11, %c0_12] : memref<3x128x128xf32, #tpu.memory_space<vmem>>, vector<1x128x128xf32>
    %18 = vector.shape_cast %17 : vector<1x128x128xf32> to vector<128x128xf32>
    %c2_13 = arith.constant 2 : index
    %c0_14 = arith.constant 0 : index
    %19 = vector.load %arg3[%c2_13, %c0_14] : memref<3x128xf32, #tpu.memory_space<vmem>>, vector<1x128xf32>
    %cst_15 = arith.constant dense<0.000000e+00> : vector<16x128xf32>
    %20 = tpu.matmul %16, %18, %cst_15 {dimension_numbers = #tpu.dot_dimension_numbers<[1], [0], [0], [1], [0, 0, 1, 1], [], []>} : vector<16x128xf32>, vector<128x128xf32>, vector<16x128xf32> -> vector<16x128xf32>
    %21 = vector.broadcast %19 : vector<1x128xf32> to vector<16x128xf32>
    %22 = arith.addf %20, %21 : vector<16x128xf32>
    %23 = arith.mulf %0, %22 : vector<16x128xf32>
    %24 = arith.addf %23, %16 : vector<16x128xf32>
    %c0_16 = arith.constant 0 : index
    %c0_17 = arith.constant 0 : index
    %25 = vector.load %arg4[%c0_16, %c0_17] : memref<16x128xf32, #tpu.memory_space<vmem>>, vector<16x128xf32>
    tpu.vector_store %arg4[%c0_16, %c0_17], %24 {strides = array<i32>} : memref<16x128xf32, #tpu.memory_space<vmem>>, vector<16x128xf32>,
    return
  }
  func.func @transform_0(%arg0: i32) -> (i32, i32) {
    %c0_i32 = arith.constant 0 : i32
    %c0_i32_0 = arith.constant 0 : i32
    return %arg0, %c0_i32 : i32, i32
  }
  func.func @transform_1(%arg0: i32) -> (i32, i32, i32) {
    %c0_i32 = arith.constant 0 : i32
    %c0_i32_0 = arith.constant 0 : i32
    %c0_i32_1 = arith.constant 0 : i32
    %c0_i32_2 = arith.constant 0 : i32
    return %c0_i32, %c0_i32_0, %c0_i32_1 : i32, i32, i32
  }
  func.func @transform_2(%arg0: i32) -> (i32, i32) {
    %c0_i32 = arith.constant 0 : i32
    %c0_i32_0 = arith.constant 0 : i32
    %c0_i32_1 = arith.constant 0 : i32
    return %c0_i32, %c0_i32_0 : i32, i32
  }
  func.func @transform_3(%arg0: i32) -> (i32, i32) {
    %c0_i32 = arith.constant 0 : i32
    %c0_i32_0 = arith.constant 0 : i32
    return %arg0, %c0_i32 : i32, i32
  }
}

</mosaic_0001>

<bundles_post_ra>
// kernel: tpu_custom_call.1
= control target key start
LH: loop header
LB: loop body
LE: loop exit
PB: predicated region body
PF: predicated region fallthrough
CT: control target
= control target key end

     0   :  { %8 = vsyncpa [#allocation3], 0  ;;  %s938_s0 = inlined_call_operand.hbm [shape: f32[64,128], index: 0, kind: input, shape index: {}]   ;;  %s939_s1 = inlined_call_operand.hbm [shape: f32[3,128,128], index: 1, kind: input, shape index: {}]   ;;  %s940_s2 = inlined_call_operand.hbm [shape: f32[3,128], index: 2, kind: input, shape index: {}]   ;;  %s941_s3 = inlined_call_operand.hbm [shape: f32[64,128], index: 3, kind: output, shape index: {}]  }
   0x1   :  { %10 = vsyncpa [#allocation3 + $0x1], 0 }
   0x2   :  { %11 = vsyncpa [#allocation6], 0 }
   0x3   :  { %12 = vsyncpa [#allocation4], 0 }
   0x4   :  { %14 = vsyncpa [#allocation4 + $0x1], 0  ;;  %s771_s12 = smov 0   ;;  %s773_s13 = smov 0  }
   0x5   :  { %s775_s14 = smov 0   ;;  %s777_s15 = smov 0  }
   0x6 LB: > { %s792_s16 = sadd.s32 4294967295, %s743_s15   ;;  %s473_s17 = sadd.s32 4294967294, %s743_s15   ;;  %s743_s15 = sphi %s777_s15, %s950_s15   ;;  %s739_s14 = sphi %s775_s14, %s949_s14   ;;  %s735_s13 = sphi %s773_s13, %s948_s13   ;;  %s731_s12 = sphi %s771_s12, %s947_s12  }
   0x7   : > { %p40_p0 = scmp.ne.s32.totalorder %s735_s13, %s731_s12  ;;  %p41_p1 = scmp.eq.s32.totalorder %s792_s16, 0 }
   0x8   : > { %p106_p2 = scmp.eq.s32.totalorder %s792_s16, 3  ;;  %p112_p3 = scmp.eq.s32.totalorder %s473_s17, 3 }
   0x9   : > { %p801_p4 = por %p41_p1, %p40_p0  ;;  %p474_p5 = scmp.ge.s32.totalorder %s743_s15, 1 }
   0xa   : > { %p806_p6 = por %p112_p3, %p40_p0  ;;  %p119_p7 = scmp.lt.s32.totalorder %s743_s15, 5 }
   0xb   : > { %s130_s22 = sshll.u32 %s939_s1, 4  ;;  %s745_s24 = smov [#allocation5]   ;;  %s131_s22 = int_to_ptr.hbm [resolvable:$true] %s130_s22 }
   0xc   : > { %p814_p8 = pnand %p474_p5, %p119_p7  ;;  %s132_s25 = sshll.u32 %s745_s24, 4  ;;  %s133_s25 = int_to_ptr.vmem [resolvable:$true] %s132_s25 }
   0xd   : > { %s145_s28 = sshll.u32 %s940_s2, 4  ;;  %s746_s29 = smov 128   ;;  %s146_s28 = int_to_ptr.hbm [resolvable:$true] %s145_s28 }
   0xe   : > { %p521_p9 = pneg %p814_p8  ;;  %s747_s30 = smov 8  }
   0xf   : > { %s748_s4 = smov [#allocation7]   ;;  %s829_s6 = sadd.s32 1, %s743_s15  }
  0x10   : > { %p522_p10 = pnand %p521_p9, %p41_p1  ;;  %s147_s5 = sshll.u32 %s748_s4, 4  ;;  %s148_s5 = int_to_ptr.vmem [resolvable:$true] %s147_s5 }
  0x11   : > { %s27_s7 = sadd.s32 1, %s739_s14  ;;  %s24_s8 = ssub.s32 %s743_s15, %s829_s6 }
  0x12   : > { %524 = dma.hbm_to_vmem [thread:$0]  (!%p522_p10), %s131_s22, 6144, %s133_s25, [#allocation6], %s746_s29, %s746_s29, %s747_s30  }
  0x13   : > { %527 = dma.hbm_to_vmem [thread:$0]  (!%p522_p10), %s146_s28, 64, %s148_s5, [#allocation6]  }
  0x14   : > { %p34_p11 = scmp.ne.s32.totalorder %s739_s14, %s735_s13  ;;  %p25_p12 = scmp.eq.s32.totalorder %s24_s8, 0 }
  0x15   : > { %p35_p13 = scmp.eq.s32.totalorder %s743_s15, 0  ;;  %p538_p3 = scmp.lt.s32.totalorder %s743_s15, 4 }
  0x16   : > { %p839_p0 = por %p106_p2, %p34_p11  ;;  %s158_s11 = sand.u32 1, %s739_s14  }
  0x17   : > { %s845_s10 = scalar_select %p25_p12, %s739_s14, %s27_s7  }
  0x18   : > { %p36_p5 = por %p35_p13, %p34_p11  ;;  %s478_s17 = sshll.u32 %s158_s11, 4 }
  0x19   : > { %s491_s20 = sshll.u32 %s743_s15, 4  ;;  %s162_s25 = scalar_lea.vmem [#allocation2], %s478_s17 }
  0x1a   : > { %s167_s24 = scalar_lea.hbm %s938_s0, %s491_s20  ;;  %s170_s26 = sshll.u32 %s162_s25, 4  ;;  %s171_s26 = int_to_ptr.vmem [resolvable:$true] %s170_s26 }
  0x1b   : > { %s168_s27 = sshll.u32 %s167_s24, 4  ;;  %p852_p2 = pnand %p538_p3, %p36_p5  ;;  %s169_s27 = int_to_ptr.hbm [resolvable:$true] %s168_s27 }
  0x1c   : > { %s159_s4 = scalar_lea.sflag [#allocation3], %s158_s11  ;;  %s643_s5 = sshra.s32 %s169_s27, 4  ;;  %s644_s5 = int_to_ptr.hbm [resolvable:$true] %s643_s5 }
  0x1d   : > { %s645_s7 = scalar_lea.hbm %s644_s5, 16  ;;  %p647_p9 = pneg %p852_p2 }
  0x1e   : > { %p646_p7 = scmp.ne.s32.totalorder %s644_s5, %s645_s7  ;;  %s650_s20 = scalar_lea.hbm %s938_s0, 64 }
  0x1f   : > { %p651_p12 = scmp.lt.s32.totalorder %s644_s5, %s938_s0  ;;  %p652_p13 = scmp.lt.s32.totalorder %s650_s20, %s645_s7 }
  0x20   : > { %p648_p10 = pnand %p647_p9, %p646_p7 }
  0x21   : > { %p653_p3 = por %p652_p13, %p651_p12 }
  0x22   : > { %p649_p11 = pneg %p648_p10 }
  0x24   : > { %p654_p5 = pnand %p653_p3, %p649_p11 }
  0x26   : > { %657 = shalt.err (!%p654_p5)
}
  0x27   : > { %531 = dma.hbm_to_vmem [thread:$0]  (!%p852_p2), %s169_s27, 256, %s171_s26, %s159_s4, %s746_s29, %s746_s29, %s747_s30  }
  0x28   : > { %182 = sbr.rel (%p814_p8) target bundleno = 494 (0x1ee), region = 32  ;;  %s872_s11 = sand.u32 (!%p814_p8), 1, %s735_s13  }
  0x29   : > { %s482_s24 = sshll.u32 (!%p814_p8), %s872_s11, 4  ;;  %s185_s25 = scalar_lea.sflag (!%p814_p8), [#allocation3], %s872_s11 }
  0x2a   : > { %s878_s5 = scalar_lea.vmem (!%p814_p8), [#allocation2], %s482_s24 }
  0x2d   : > { %718 = dma.done.wait (%p801_p4), %s185_s25, 256  }
  0x2e   : > { %720 = vsyncadd (%p801_p4), %s185_s25, 4294967040 }
  0x2f   : > { %722 = dma.done.wait (%p41_p1), [#allocation6], 6208  }
  0x30   : > { %724 = vsyncadd (%p41_p1), [#allocation6], 4294961088  ;;  %v241_v0 = vld [vmem:[#allocation5 + $0x78] sm:$0xff]  ;;  %v240_v1 = vld [vmem:[#allocation5 + $0x70] sm:$0xff]  ;;  %s492_s18 = sshll.u32 %s792_s16, 4  ;;  %s221_s26 = scalar_lea.vmem [#allocation8], %s482_s24 }
  0x31   : > { %244 = vmatpush.msra.mxu0 %v241_v0  ;;  %493 = vmatpush.msra.mxu3 %v241_v0  ;;  %v239_v2 = vld [vmem:[#allocation5 + $0x68] sm:$0xff]  ;;  %v238_v3 = vld [vmem:[#allocation5 + $0x60] sm:$0xff]  ;;  %v237_v4 = vld [vmem:[#allocation5 + $0x58] sm:$0xff]  ;;  %s377_s30 = scalar_lea.hbm %s941_s3, %s492_s18  ;;  %s378_s27 = sshll.u32 %s221_s26, 4  ;;  %s379_s27 = int_to_ptr.vmem [resolvable:$true] %s378_s27 }
  0x32   : > { %v287_v5 = vld [vmem:[#allocation5 + $0xf8] sm:$0xff]  ;;  %v286_v6 = vld [vmem:[#allocation5 + $0xf0] sm:$0xff]  ;;  %v285_v8 = vld [vmem:[#allocation5 + $0xe8] sm:$0xff]  ;;  %s380_s28 = sshll.u32 %s377_s30, 4  ;;  %s366_s16 = scalar_lea.sflag [#allocation4], %s872_s11  ;;  %s381_s28 = int_to_ptr.hbm [resolvable:$true] %s380_s28 }
  0x33   : > { %245 = vmatpush.msra.mxu0 %v240_v1  ;;  %494 = vmatpush.msra.mxu3 %v240_v1  ;;  %v236_v7 = vld [vmem:[#allocation5 + $0x50] sm:$0xff]  ;;  %v235_v9 = vld [vmem:[#allocation5 + $0x48] sm:$0xff]  ;;  %v284_v10 = vld [vmem:[#allocation5 + $0xe0] sm:$0xff]  ;;  %s687_s4 = sshra.s32 %s381_s28, 4  ;;  %s693_s20 = scalar_lea.hbm %s941_s3, 64  ;;  %s688_s4 = int_to_ptr.hbm [resolvable:$true] %s687_s4 }
  0x34   : > { %290 = vmatpush.msra.mxu1 %v287_v5  ;;  %v234_v11 = vld [vmem:[#allocation5 + $0x40] sm:$0xff]  ;;  %v283_v12 = vld [vmem:[#allocation5 + $0xd8] sm:$0xff]  ;;  %v282_v14 = vld [vmem:[#allocation5 + $0xd0] sm:$0xff]  ;;  %s689_s7 = scalar_lea.hbm %s688_s4, 16  ;;  %p694_p2 = scmp.lt.s32.totalorder %s688_s4, %s941_s3 }
  0x35   : > { %246 = vmatpush.msra.mxu0 %v239_v2  ;;  %495 = vmatpush.msra.mxu3 %v239_v2  ;;  %v233_v13 = vld [vmem:[#allocation5 + $0x38] sm:$0xff]  ;;  %v232_v15 = vld [vmem:[#allocation5 + $0x30] sm:$0xff]  ;;  %v281_v16 = vld [vmem:[#allocation5 + $0xc8] sm:$0xff]  ;;  %p690_p1 = scmp.ne.s32.totalorder %s688_s4, %s689_s7  ;;  %p695_p7 = scmp.lt.s32.totalorder %s693_s20, %s689_s7 }
  0x36   : > { %291 = vmatpush.msra.mxu1 %v286_v6  ;;  %v231_v17 = vld [vmem:[#allocation5 + $0x28] sm:$0xff]  ;;  %v280_v18 = vld [vmem:[#allocation5 + $0xc0] sm:$0xff]  ;;  %v279_v20 = vld [vmem:[#allocation5 + $0xb8] sm:$0xff] }
  0x37   : > { %247 = vmatpush.msra.mxu0 %v238_v3  ;;  %496 = vmatpush.msra.mxu3 %v238_v3  ;;  %v230_v19 = vld [vmem:[#allocation5 + $0x20] sm:$0xff]  ;;  %v229_v21 = vld [vmem:[#allocation5 + $0x18] sm:$0xff]  ;;  %v278_v22 = vld [vmem:[#allocation5 + $0xb0] sm:$0xff]  ;;  %p691_p4 = pnand %p690_p1, %p839_p0  ;;  %p696_p9 = por %p695_p7, %p694_p2 }
  0x38   : > { %292 = vmatpush.msra.mxu1 %v285_v8  ;;  %v228_v23 = vld [vmem:[#allocation5 + $0x10] sm:$0xff]  ;;  %v277_v24 = vld [vmem:[#allocation5 + $0xa8] sm:$0xff]  ;;  %v276_v26 = vld [vmem:[#allocation5 + $0xa0] sm:$0xff] }
  0x39   : > { %248 = vmatpush.msra.mxu0 %v237_v4  ;;  %497 = vmatpush.msra.mxu3 %v237_v4  ;;  %v227_v25 = vld [vmem:[#allocation5 + $0x8] sm:$0xff]  ;;  %v226_v27 = vld [vmem:[#allocation5] sm:$0xff]  ;;  %v275_v30 = vld [vmem:[#allocation5 + $0x98] sm:$0xff]  ;;  %p692_p8 = pneg %p691_p4 }
  0x3a   : > { %293 = vmatpush.msra.mxu1 %v284_v10  ;;  %v889_v28 = vld [vmem:[%s878_s5] sm:$0xff]  ;;  %v892_v29 = vld [vmem:[%s878_s5 + $0x8] sm:$0xff] }
  0x3b   : > { %249 = vmatpush.msra.mxu0 %v236_v7  ;;  %498 = vmatpush.msra.mxu3 %v236_v7  ;;  %v274_v31 = vld [vmem:[#allocation5 + $0x90] sm:$0xff]  ;;  %v273_v32 = vld [vmem:[#allocation5 + $0x88] sm:$0xff]  ;;  %v272_v33 = vld [vmem:[#allocation5 + $0x80] sm:$0xff]  ;;  %p697_p10 = pnand %p696_p9, %p692_p8 }
  0x3c   : > { %294 = vmatpush.msra.mxu1 %v283_v12  ;;  %v333_v34 = vld [vmem:[#allocation5 + $0x178] sm:$0xff]  ;;  %v332_v35 = vld [vmem:[#allocation5 + $0x170] sm:$0xff]  ;;  %v331_v36 = vld [vmem:[#allocation5 + $0x168] sm:$0xff] }
  0x3d   : > { %250 = vmatpush.msra.mxu0 %v235_v9  ;;  %499 = vmatpush.msra.mxu3 %v235_v9  ;;  %v330_v37 = vld [vmem:[#allocation5 + $0x160] sm:$0xff]  ;;  %v329_v38 = vld [vmem:[#allocation5 + $0x158] sm:$0xff]  ;;  %v328_v39 = vld [vmem:[#allocation5 + $0x150] sm:$0xff] }
  0x3e   : > { %295 = vmatpush.msra.mxu1 %v282_v14  ;;  %336 = vmatpush.msra.mxu2 %v333_v34  ;;  %v327_v40 = vld [vmem:[#allocation5 + $0x148] sm:$0xff]  ;;  %v326_v41 = vld [vmem:[#allocation5 + $0x140] sm:$0xff]  ;;  %v325_v43 = vld [vmem:[#allocation5 + $0x138] sm:$0xff] }
  0x3f   : > { %251 = vmatpush.msra.mxu0 %v234_v11  ;;  %500 = vmatpush.msra.mxu3 %v234_v11  ;;  %v580_v42 = vld [vmem:[#allocation7] ss:$0 sm:$0xff]  ;;  %v324_v44 = vld [vmem:[#allocation5 + $0x130] sm:$0xff]  ;;  %v323_v47 = vld [vmem:[#allocation5 + $0x128] sm:$0xff] }
  0x40   : > { %296 = vmatpush.msra.mxu1 %v281_v16  ;;  %337 = vmatpush.msra.mxu2 %v332_v35  ;;  %v322_v49 = vld [vmem:[#allocation5 + $0x120] sm:$0xff]  ;;  %v321_v55 = vld [vmem:[#allocation5 + $0x118] sm:$0xff]  ;;  %v320_v56 = vld [vmem:[#allocation5 + $0x110] sm:$0xff] }
  0x41   : > { %252 = vmatpush.msra.mxu0 %v233_v13  ;;  %501 = vmatpush.msra.mxu3 %v233_v13  ;;  %v319_v57 = vld [vmem:[#allocation5 + $0x108] sm:$0xff]  ;;  %v318_v58 = vld [vmem:[#allocation5 + $0x100] sm:$0xff] }
  0x42   : > { %297 = vmatpush.msra.mxu1 %v280_v18  ;;  %338 = vmatpush.msra.mxu2 %v331_v36  ;;  %v581_v59 = vld [vmem:[#allocation7 + $0x1] ss:$0 sm:$0xff]  ;;  %v582_v4 = vld [vmem:[#allocation7 + $0x2] ss:$0 sm:$0xff] }
  0x43   : > { %253 = vmatpush.msra.mxu0 %v232_v15  ;;  %502 = vmatpush.msra.mxu3 %v232_v15 }
  0x44   : > { %298 = vmatpush.msra.mxu1 %v279_v20  ;;  %339 = vmatpush.msra.mxu2 %v330_v37 }
  0x45   : > { %254 = vmatpush.msra.mxu0 %v231_v17  ;;  %503 = vmatpush.msra.mxu3 %v231_v17 }
  0x46   : > { %299 = vmatpush.msra.mxu1 %v278_v22  ;;  %340 = vmatpush.msra.mxu2 %v329_v38 }
  0x47   : > { %255 = vmatpush.msra.mxu0 %v230_v19  ;;  %504 = vmatpush.msra.mxu3 %v230_v19 }
  0x48   : > { %300 = vmatpush.msra.mxu1 %v277_v24  ;;  %341 = vmatpush.msra.mxu2 %v328_v39 }
  0x49   : > { %256 = vmatpush.msra.mxu0 %v229_v21  ;;  %505 = vmatpush.msra.mxu3 %v229_v21 }
  0x4a   : > { %301 = vmatpush.msra.mxu1 %v276_v26  ;;  %342 = vmatpush.msra.mxu2 %v327_v40 }
  0x4b   : > { %257 = vmatpush.msra.mxu0 %v228_v23  ;;  %506 = vmatpush.msra.mxu3 %v228_v23 }
  0x4c   : > { %302 = vmatpush.msra.mxu1 %v275_v30  ;;  %343 = vmatpush.msra.mxu2 %v326_v41 }
  0x4d   : > { %258 = vmatpush.msra.mxu0 %v227_v25  ;;  %507 = vmatpush.msra.mxu3 %v227_v25 }
  0x4e   : > { %303 = vmatpush.msra.mxu1 %v274_v31  ;;  %344 = vmatpush.msra.mxu2 %v325_v43 }
  0x4f   : > { %259 = vmatpush.msra.mxu0 %v226_v27  ;;  %508 = vmatpush.msra.mxu3 %v226_v27 }
  0x50   : > { %260 = vmatmul.f32.vlgmr.msra.gmra.mxu0 %v889_v28  ;;  %263 = vmatmul.f32.vlgmr.msra.gmra.mxu3 %v892_v29 }
  0x51   : > { %304 = vmatpush.msra.mxu1 %v273_v32  ;;  %345 = vmatpush.msra.mxu2 %v324_v44 }
  0x53   : > { %305 = vmatpush.msra.mxu1 %v272_v33  ;;  %346 = vmatpush.msra.mxu2 %v323_v47 }
  0x55   : > { %347 = vmatpush.msra.mxu2 %v322_v49 }
  0x57   : > { %348 = vmatpush.msra.mxu2 %v321_v55 }
  0x59   : > { %349 = vmatpush.msra.mxu2 %v320_v56 }
  0x5b   : > { %350 = vmatpush.msra.mxu2 %v319_v57 }
  0x5d   : > { %351 = vmatpush.msra.mxu2 %v318_v58 }
  0xcd   : > { %v261_v45 = vpop.f32.mrf.mxu0 }
  0xce   : > { %v262_v46 = vadd.f32 %v580_v42, %v261_v45 }
  0xd0   : > { %v267_v48 = vmul.f32 %v262_v46, %v889_v28 }
  0xd2   : > { %v269_v50 = vadd.f32 %v267_v48, %v889_v28 }
  0xd3   : > { %v264_v51 = vpop.f32.mrf.mxu3 }
  0xd4   : > { %306 = vmatmul.f32.vlgmr.msra.gmra.mxu1 %v269_v50  ;;  %v265_v52 = vadd.f32 %v580_v42, %v264_v51 }
  0xd6   : > { %v268_v53 = vmul.f32 %v265_v52, %v892_v29 }
  0xd8   : > { %v270_v54 = vadd.f32 %v268_v53, %v892_v29 }
  0xdc   : > { %309 = vmatmul.f32.gmra.mxu1 %v270_v54 }
 0x151   : > { %v307_v60 = vpop.f32.mrf.mxu1 }
 0x152   : > { %v308_v61 = vadd.f32 %v581_v59, %v307_v60 }
 0x154   : > { %v313_v62 = vmul.f32 %v308_v61, %v889_v28 }
 0x156   : > { %v315_v63 = vadd.f32 %v313_v62, %v269_v50 }
 0x158   : > { %352 = vmatmul.f32.vlgmr.msra.gmra.mxu2 %v315_v63 }
 0x159   : > { %v310_v0 = vpop.f32.mrf.mxu1 }
 0x15a   : > { %v311_v1 = vadd.f32 %v581_v59, %v310_v0 }
 0x15c   : > { %v314_v2 = vmul.f32 %v311_v1, %v892_v29 }
 0x15e   : > { %v316_v3 = vadd.f32 %v314_v2, %v270_v54 }
 0x160   : > { %355 = vmatmul.f32.gmra.mxu2 %v316_v3 }
 0x1db   : > { %v353_v5 = vpop.f32.mrf.mxu2 }
 0x1dc   : > { %v354_v6 = vadd.f32 %v582_v4, %v353_v5 }
 0x1de   : > { %v359_v7 = vmul.f32 %v354_v6, %v889_v28 }
 0x1e0   : > { %v361_v8 = vadd.f32 %v359_v7, %v315_v63 }
 0x1e2   : > { %363 = vst [vmem:[%s221_s26] sm:$0xff] %v361_v8 }
 0x1e3   : > { %v356_v9 = vpop.f32.mrf.mxu2 }
 0x1e4   : > { %v357_v10 = vadd.f32 %v582_v4, %v356_v9 }
 0x1e6   : > { %v360_v11 = vmul.f32 %v357_v10, %v892_v29 }
 0x1e8   : > { %v362_v12 = vadd.f32 %v360_v11, %v316_v3 }
 0x1ea   : > { %364 = vst [vmem:[%s221_s26 + $0x8] sm:$0xff] %v362_v12 }
 0x1eb   : > { %700 = shalt.err (!%p697_p10)
}
 0x1ec   : > { %s749_s11 = smov 128   ;;  %s750_s24 = smov 8  }
 0x1ed   : > { %519 = dma.vmem_to_hbm [thread:$0]  (%p839_p0), %s379_s27, 256, %s381_s28, %s366_s16, %s749_s11, %s749_s11, %s750_s24  }
 0x1ee PF: > { %p541_p11 = scmp.ge.s32.totalorder %s743_s15, 2  ;;  %s395_s25 = sand.u32 1, %s731_s12  }
 0x1ef   : > { %s396_s5 = scalar_lea.sflag [#allocation4], %s395_s25 }
 0x1f0   : > { %p533_p12 = pnand %p541_p11, %p806_p6 }
 0x1f2   : > { %p534_p13 = pneg %p533_p12 }
 0x1f4   : > { %726 = dma.done.wait (%p534_p13), %s396_s5, 256  }
 0x1f5   : > { %728 = vsyncadd (%p534_p13), %s396_s5, 4294967040  ;;  %p17_p3 = scmp.ge.s32.totalorder %s829_s6, 6   ;;  %s947_s12 = smov %s735_s13 }
 0x1f6   : > { %s948_s13 = smov %s739_s14  ;;  %s949_s14 = smov %s845_s10 }
 0x1f7   : > { %s950_s15 = smov %s829_s6  ;;  %19 = sbr.rel (!%p17_p3) target bundleno = 6 (0x6), region = 87 }
 0x1fc   :  { %402 = vsyncpa [#allocation3], 1 }
 0x1fd   :  { %404 = vsyncpa [#allocation3 + $0x1], 1 }
 0x1fe   :  { %405 = vsyncpa [#allocation6], 1 }
 0x1ff   :  { %406 = vsyncpa [#allocation4], 1 }
 0x200   :  { %408 = vsyncpa [#allocation4 + $0x1], 1 }

</bundles_post_ra>
